<compile_context>
chip_gen: v7x
topology: tpu7x:2x2x1
jax: 0.10.0
libtpu: 0.0.40
codegen_flags: <defaults>
</compile_context>

<pallas_src>
import jax
import jax.numpy as jnp
from jax.experimental import pallas as pl
from jax.experimental.pallas import tpu as pltpu


def _complex_dropout2d_kernel(xr_ref, xi_ref, sr_ref, si_ref, or_ref, oi_ref):
    """Per-channel dropout scaling.

    xr_ref / xi_ref : (TR, L) float32  -- flattened (N*C, H*W) real / imag planes
    sr_ref / si_ref : (TR, 1) float32  -- per-channel keep * 1/(1-p) scale factors
    """
    or_ref[...] = xr_ref[...] * sr_ref[...]   # broadcast along lanes, VPU only
    oi_ref[...] = xi_ref[...] * si_ref[...]


def _dropout2d_scales(key, p, rows):
    """Per-(n, c) scale factors: keep/(1-p), drawn independently for real and imag
    (matches the two separate F.dropout2d calls in the PyTorch module)."""
    kr, ki = jax.random.split(key)
    scale = 1.0 / (1.0 - p)
    sr = jax.random.bernoulli(kr, 1.0 - p, (rows,)).astype(jnp.float32) * scale
    si = jax.random.bernoulli(ki, 1.0 - p, (rows,)).astype(jnp.float32) * scale
    return sr, si


def _row_tile(rows, cols):
    """Largest row tile (multiple of 8, or the full extent) within ~1 MiB/buffer."""
    budget_elems = 256 * 1024          # 1 MiB of f32 per (double-buffered) operand
    if rows * cols <= budget_elems:
        return rows                    # whole array in one grid step
    tr = max(8, (budget_elems // max(cols, 1)) // 8 * 8)
    return min(tr, rows)


def complex_dropout2d(x, key, p=0.5, training=True):
    """ComplexDropout2d forward. x: complex64 (N, C, H, W) -> complex64 (N, C, H, W)."""
    if not training or p == 0.0:
        return x                        # eval / p=0: identity (matches PyTorch)
    if p >= 1.0:
        return jnp.zeros_like(x)        # every channel dropped

    N, C, H, W = x.shape
    rows, cols = N * C, H * W

    sr, si = _dropout2d_scales(key, p, rows)
    sr = sr.reshape(rows, 1)
    si = si.reshape(rows, 1)

    # Lane-dense layout: channels on sublanes, H*W on lanes (reshape of a
    # contiguous array is free).
    # TODO(synk): XLA disallows bitcast between complex64 and float32, so the
    # real/imag de-interleave (and the final re-interleave into complex64) stays
    # outside the kernel as XLA ops rather than an in-kernel roll+mask.
    xr = jnp.real(x).reshape(rows, cols)
    xi = jnp.imag(x).reshape(rows, cols)

    tr = _row_tile(rows, cols)
    grid = (pl.cdiv(rows, tr),)

    x_spec = pl.BlockSpec((tr, cols), lambda i: (i, 0))
    s_spec = pl.BlockSpec((tr, 1), lambda i: (i, 0))

    cost = pl.CostEstimate(
        flops=2 * rows * cols,                              # 1 mul/elem, 2 planes
        transcendentals=0,
        bytes_accessed=4 * rows * cols * 4 + 2 * rows * 4,  # 2 in + 2 out + scales
    )

    out_r, out_i = pl.pallas_call(
        _complex_dropout2d_kernel,
        out_shape=(jax.ShapeDtypeStruct((rows, cols), jnp.float32),
                   jax.ShapeDtypeStruct((rows, cols), jnp.float32)),
        grid=grid,
        in_specs=[x_spec, x_spec, s_spec, s_spec],
        out_specs=(x_spec, x_spec),
        compiler_params=pltpu.CompilerParams(dimension_semantics=("parallel",)),
        cost_estimate=cost,
    )(xr, xi, sr, si)

    return jax.lax.complex(out_r, out_i).reshape(N, C, H, W)


def _reference_complex_dropout2d(x, key, p):
    """Pure-JAX reference using the same per-channel masks (different code path)."""
    N, C, H, W = x.shape
    sr, si = _dropout2d_scales(key, p, N * C)
    sr = sr.reshape(N, C, 1, 1)
    si = si.reshape(N, C, 1, 1)
    return jax.lax.complex(jnp.real(x) * sr, jnp.imag(x) * si)


if __name__ == "__main__":
    key = jax.random.PRNGKey(0)
    k_re, k_im, k_drop = jax.random.split(key, 3)

    N, C, H, W = 2, 4, 16, 16
    p = 0.5
    x = jax.lax.complex(
        jax.random.normal(k_re, (N, C, H, W), dtype=jnp.float32),
        jax.random.normal(k_im, (N, C, H, W), dtype=jnp.float32),
    )

    out = complex_dropout2d(x, k_drop, p=p, training=True)
    out = jax.block_until_ready(out)

    ref = _reference_complex_dropout2d(x, k_drop, p)
    assert out.shape == (N, C, H, W)
    assert out.dtype == jnp.complex64
    assert jnp.allclose(out, ref, atol=1e-6, rtol=1e-6)

    # Eval mode is the identity (PyTorch training=False behaviour).
    out_eval = complex_dropout2d(x, k_drop, p=p, training=False)
    assert jnp.array_equal(out_eval, x)

    print("KERNEL_OK")
</pallas_src>

<mosaic_0001>
module attributes {stable_mosaic.version = 11 : i64} {
  func.func @_complex_dropout2d_kernel(%arg0: i32, %arg1: memref<8x256xf32, #tpu.memory_space<vmem>>, %arg2: memref<8x256xf32, #tpu.memory_space<vmem>>, %arg3: memref<8x1xf32, #tpu.memory_space<vmem>>, %arg4: memref<8x1xf32, #tpu.memory_space<vmem>>, %arg5: memref<8x256xf32, #tpu.memory_space<vmem>>, %arg6: memref<8x256xf32, #tpu.memory_space<vmem>>) attributes {dimension_semantics = [#tpu.dimension_semantics<parallel>], iteration_bounds = array<i64: 1>, scalar_prefetch = 0 : i64, scratch_operands = 0 : i64, tpu.core_type = #tpu.core_type<tc>, window_params = [{transform_indices = @transform_0, window_bounds = array<i64: 8, 256>}, {transform_indices = @transform_1, window_bounds = array<i64: 8, 256>}, {transform_indices = @transform_2, window_bounds = array<i64: 8, 1>}, {transform_indices = @transform_3, window_bounds = array<i64: 8, 1>}, {transform_indices = @transform_4, window_bounds = array<i64: 8, 256>}, {transform_indices = @transform_5, window_bounds = array<i64: 8, 256>}]} {
    %c0 = arith.constant 0 : index
    %c0_0 = arith.constant 0 : index
    %0 = vector.load %arg1[%c0, %c0_0] : memref<8x256xf32, #tpu.memory_space<vmem>>, vector<8x256xf32>
    %c0_1 = arith.constant 0 : index
    %c0_2 = arith.constant 0 : index
    %1 = vector.load %arg3[%c0_1, %c0_2] : memref<8x1xf32, #tpu.memory_space<vmem>>, vector<8x1xf32>
    %2 = vector.broadcast %1 : vector<8x1xf32> to vector<8x256xf32>
    %3 = arith.mulf %0, %2 : vector<8x256xf32>
    %c0_3 = arith.constant 0 : index
    %c0_4 = arith.constant 0 : index
    %4 = vector.load %arg5[%c0_3, %c0_4] : memref<8x256xf32, #tpu.memory_space<vmem>>, vector<8x256xf32>
    tpu.vector_store %arg5[%c0_3, %c0_4], %3 {strides = array<i32>} : memref<8x256xf32, #tpu.memory_space<vmem>>, vector<8x256xf32>,
    %c0_5 = arith.constant 0 : index
    %c0_6 = arith.constant 0 : index
    %5 = vector.load %arg2[%c0_5, %c0_6] : memref<8x256xf32, #tpu.memory_space<vmem>>, vector<8x256xf32>
    %c0_7 = arith.constant 0 : index
    %c0_8 = arith.constant 0 : index
    %6 = vector.load %arg4[%c0_7, %c0_8] : memref<8x1xf32, #tpu.memory_space<vmem>>, vector<8x1xf32>
    %7 = vector.broadcast %6 : vector<8x1xf32> to vector<8x256xf32>
    %8 = arith.mulf %5, %7 : vector<8x256xf32>
    %c0_9 = arith.constant 0 : index
    %c0_10 = arith.constant 0 : index
    %9 = vector.load %arg6[%c0_9, %c0_10] : memref<8x256xf32, #tpu.memory_space<vmem>>, vector<8x256xf32>
    tpu.vector_store %arg6[%c0_9, %c0_10], %8 {strides = array<i32>} : memref<8x256xf32, #tpu.memory_space<vmem>>, vector<8x256xf32>,
    return
  }
  func.func @transform_0(%arg0: i32) -> (i32, i32) {
    %c0_i32 = arith.constant 0 : i32
    %c0_i32_0 = arith.constant 0 : i32
    return %arg0, %c0_i32 : i32, i32
  }
  func.func @transform_1(%arg0: i32) -> (i32, i32) {
    %c0_i32 = arith.constant 0 : i32
    %c0_i32_0 = arith.constant 0 : i32
    return %arg0, %c0_i32 : i32, i32
  }
  func.func @transform_2(%arg0: i32) -> (i32, i32) {
    %c0_i32 = arith.constant 0 : i32
    %c0_i32_0 = arith.constant 0 : i32
    return %arg0, %c0_i32 : i32, i32
  }
  func.func @transform_3(%arg0: i32) -> (i32, i32) {
    %c0_i32 = arith.constant 0 : i32
    %c0_i32_0 = arith.constant 0 : i32
    return %arg0, %c0_i32 : i32, i32
  }
  func.func @transform_4(%arg0: i32) -> (i32, i32) {
    %c0_i32 = arith.constant 0 : i32
    %c0_i32_0 = arith.constant 0 : i32
    return %arg0, %c0_i32 : i32, i32
  }
  func.func @transform_5(%arg0: i32) -> (i32, i32) {
    %c0_i32 = arith.constant 0 : i32
    %c0_i32_0 = arith.constant 0 : i32
    return %arg0, %c0_i32 : i32, i32
  }
}

</mosaic_0001>

<bundles_post_ra>
// kernel: tpu_custom_call.1
= control target key start
LH: loop header
LB: loop body
LE: loop exit
PB: predicated region body
PF: predicated region fallthrough
CT: control target
= control target key end

     0   :  { %11 = vsyncpa [#allocation3], 0  ;;  %s245_s0 = inlined_call_operand.vmem [shape: f32[8,256], index: 0, kind: input, shape index: {}]   ;;  %s246_s1 = inlined_call_operand.hbm [shape: f32[8,256], index: 1, kind: input, shape index: {}]   ;;  %s247_s2 = inlined_call_operand.vmem [shape: f32[8,1], index: 2, kind: input, shape index: {}]   ;;  %s248_s3 = inlined_call_operand.vmem [shape: f32[8,1], index: 3, kind: input, shape index: {}]   ;;  %s249_s4 = inlined_call_operand.hbm [shape: f32[8,256], index: 4, kind: output, shape index: {0}]   ;;  %s250_s5 = inlined_call_operand.hbm [shape: f32[8,256], index: 5, kind: output, shape index: {1}]  }
   0x1   :  { %12 = vsyncpa [#allocation4], 0 }
   0x2   :  { %13 = vsyncpa [#allocation7], 0  ;;  %s163_s18 = smov [#allocation2]   ;;  %s91_s22 = scalar_lea.hbm %s246_s1, 256 }
   0x3   :  { %s22_s19 = sshll.u32 %s163_s18, 4  ;;  %p92_p0 = scmp.ne.s32.totalorder %s246_s1, %s91_s22  ;;  %s23_s19 = int_to_ptr.vmem [resolvable:$true] %s22_s19 }
   0x4   :  { %p95_p1 = scmp.lt.u32.totalorder %s91_s22, %s246_s1 }
   0x6   :  { %p97_p2 = pnand %p95_p1, %p92_p0 }
   0x8   :  { %100 = shalt.err (!%p97_p2)
}
   0x9   :  { %s101_s27 = scalar_lea.vmem %s23_s19, 256  ;;  %p106_p4 = scmp.lt.s32.totalorder %s23_s19, %s23_s19 }
   0xa   :  { %p102_p3 = scmp.ne.s32.totalorder %s23_s19, %s101_s27  ;;  %p107_p5 = scmp.lt.s32.totalorder %s101_s27, %s101_s27 }
   0xc   :  { %p108_p6 = por %p107_p5, %p106_p4 }
   0xe   :  { %p109_p7 = pnand %p108_p6, %p102_p3 }
  0x10   :  { %112 = shalt.err (!%p109_p7)
}
  0x11   :  { %25 = dma.hbm_to_vmem [thread:$0]  %s246_s1, 256, %s23_s19, [#allocation3]  }
  0x12   :  { %157 = dma.done.wait [#allocation3], 256  }
  0x13   :  { %158 = vsyncadd [#allocation3], 4294967040  ;;  %v164_v0 = vmov 0   ;;  %v35_v1 = vld [vmem:[%s247_s2] sm:$0xff]  ;;  %v34_v4 = vld [vmem:[%s245_s0 + $0x8] sm:$0xff]  ;;  %s165_s12 = smov [#allocation5]  }
  0x14   :  { %90 = vset.pattern.permute.xlu0 %v164_v0  ;;  %v47_v2 = vld [vmem:[%s248_s3] sm:$0xff]  ;;  %s63_s13 = sshll.u32 %s165_s12, 4  ;;  %v46_v9 = vld [vmem:[#allocation2 + $0x8] sm:$0xff]  ;;  %s166_s2 = smov [#allocation6]   ;;  %s64_s13 = int_to_ptr.vmem [resolvable:$true] %s63_s13 }
  0x15   :  { %38 = vperm.xlu0 %90, %v35_v1   ;;  %v33_v3 = vld [vmem:[%s245_s0] sm:$0xff]  ;;  %s73_s14 = sshll.u32 %s166_s2, 4  ;;  %s113_s3 = scalar_lea.vmem %s64_s13, 256  ;;  %s74_s14 = int_to_ptr.vmem [resolvable:$true] %s73_s14 }
  0x16   :  { %v45_v8 = vld [vmem:[#allocation2] sm:$0xff]  ;;  %p114_p8 = scmp.ne.s32.totalorder %s64_s13, %s113_s3  ;;  %p118_p9 = scmp.lt.s32.totalorder %s64_s13, %s64_s13 }
  0x17   :  { %p119_p10 = scmp.lt.s32.totalorder %s113_s3, %s113_s3 }
  0x19   :  { %50 = vperm.xlu0 %90, %v47_v2   ;;  %p120_p11 = por %p119_p10, %p118_p9 }
  0x1b   :  { %p121_p12 = pnand %p120_p11, %p114_p8 }
  0x94   :  { %v39_v5 = vpop.permute.xlu0 %38 }
  0x95   :  { %v41_v6 = vmul.f32 %v39_v5, %v33_v3  ;;  %v42_v7 = vmul.f32 %v39_v5, %v34_v4 }
  0x97   :  { %43 = vst [vmem:[#allocation5] sm:$0xff] %v41_v6  ;;  %44 = vst [vmem:[#allocation5 + $0x8] sm:$0xff] %v42_v7 }
  0x98   :  { %v51_v10 = vpop.permute.xlu0 %50 }
  0x99   :  { %124 = shalt.err (!%p121_p12)
}
  0x9a   :  { %s125_s16 = scalar_lea.hbm %s249_s4, 256 }
  0x9b   :  { %p126_p13 = scmp.ne.s32.totalorder %s249_s4, %s125_s16  ;;  %p129_p0 = scmp.lt.u32.totalorder %s125_s16, %s249_s4 }
  0x9d   :  { %p131_p1 = pnand %p129_p0, %p126_p13 }
  0x9f   :  { %134 = shalt.err (!%p131_p1)
}
  0xa0   :  { %66 = dma.vmem_to_hbm [thread:$0]  %s64_s13, 256, %s249_s4, [#allocation4]   ;;  %v53_v11 = vmul.f32 %v51_v10, %v45_v8  ;;  %v54_v12 = vmul.f32 %v51_v10, %v46_v9 }
  0xa1   :  { %s135_s23 = scalar_lea.vmem %s74_s14, 256  ;;  %p140_p3 = scmp.lt.s32.totalorder %s74_s14, %s74_s14 }
  0xa2   :  { %55 = vst [vmem:[#allocation6] sm:$0xff] %v53_v11  ;;  %56 = vst [vmem:[#allocation6 + $0x8] sm:$0xff] %v54_v12  ;;  %p136_p2 = scmp.ne.s32.totalorder %s74_s14, %s135_s23  ;;  %p141_p4 = scmp.lt.s32.totalorder %s135_s23, %s135_s23 }
  0xa4   :  { %p142_p5 = por %p141_p4, %p140_p3 }
  0xa6   :  { %p143_p6 = pnand %p142_p5, %p136_p2 }
  0xa8   :  { %146 = shalt.err (!%p143_p6)
}
  0xa9   :  { %s147_s26 = scalar_lea.hbm %s250_s5, 256 }
  0xaa   :  { %p148_p7 = scmp.ne.s32.totalorder %s250_s5, %s147_s26  ;;  %p151_p8 = scmp.lt.u32.totalorder %s147_s26, %s250_s5 }
  0xac   :  { %p153_p9 = pnand %p151_p8, %p148_p7 }
  0xae   :  { %156 = shalt.err (!%p153_p9)
}
  0xaf   :  { %76 = dma.vmem_to_hbm [thread:$0]  %s74_s14, 256, %s250_s5, [#allocation7]  }
  0xb0   :  { %159 = dma.done.wait [#allocation4], 256  }
  0xb1   :  { %160 = vsyncadd [#allocation4], 4294967040 }
  0xb2   :  { %161 = dma.done.wait [#allocation7], 256  }
  0xb3   :  { %162 = vsyncadd [#allocation7], 4294967040 }
  0xb4   :  { %83 = vsyncpa [#allocation3], 1 }
  0xb5   :  { %84 = vsyncpa [#allocation4], 1 }
  0xb6   :  { %85 = vsyncpa [#allocation7], 1 }

</bundles_post_ra>
